<compile_context>
chip_gen: v7x
topology: tpu7x:2x2x1
jax: 0.10.0
libtpu: 0.0.40
codegen_flags: <defaults>
</compile_context>

<pallas_src>
import functools

import jax
import jax.numpy as jnp
from jax.experimental import pallas as pl
from jax.experimental.pallas import tpu as pltpu


def _round_up(x, m):
    return ((x + m - 1) // m) * m


# ----------------------------------------------------------------------------
# Fused MLP kernel: out = tanh(relu(relu(x@W1+b1)@W2+b2)@W3+b3) * scale + bias
# All three dots + epilogues execute on one batch tile per grid step;
# intermediates live only in VMEM/vregs.
# ----------------------------------------------------------------------------
def _policy_kernel(x_ref, w1_ref, b1_ref, w2_ref, b2_ref, w3_ref, b3_ref,
                   scale_ref, bias_ref, o_ref):
    h = jnp.dot(x_ref[...], w1_ref[...], preferred_element_type=jnp.float32)
    h = jnp.maximum(h + b1_ref[...], 0.0)                      # ReLU

    h = jnp.dot(h, w2_ref[...], preferred_element_type=jnp.float32)
    h = jnp.maximum(h + b2_ref[...], 0.0)                      # ReLU

    m = jnp.dot(h, w3_ref[...], preferred_element_type=jnp.float32)
    m = jnp.tanh(m + b3_ref[...]) * scale_ref[...] + bias_ref[...]
    o_ref[...] = m.astype(o_ref.dtype)


# ----------------------------------------------------------------------------
# Wrapper: pad to lane-dense shapes, tile the batch, call the fused kernel.
# ----------------------------------------------------------------------------
def deterministic_policy_forward(params, state, *, tile_m=256):
    """state: (M, num_inputs) f32 -> mean: (M, num_actions) f32."""
    w1, b1 = params["linear1"]
    w2, b2 = params["linear2"]
    w3, b3 = params["mean"]
    scale = params["action_scale"]   # scalar (action_space=None) or (A,) array
    bias = params["action_bias"]

    M, K = state.shape
    H = w1.shape[1]
    A = w3.shape[1]

    # Lane-dense padding (multiples of 128); padding is inert (zeros).
    Kp = _round_up(K, 128)
    Hp = _round_up(H, 128)
    Ap = _round_up(A, 128)

    # Batch tile: multiple of 8 sublanes, capped so VMEM stays small even at
    # large batch (2*(tm*Kp + tm*Ap)*4 + weights ≪ default scoped VMEM).
    tm = min(tile_m, _round_up(M, 8))
    Mp = _round_up(M, tm)

    f32 = jnp.float32
    xp = jnp.zeros((Mp, Kp), f32).at[:M, :K].set(state.astype(f32))
    w1p = jnp.zeros((Kp, Hp), f32).at[:K, :H].set(w1)
    b1p = jnp.zeros((1, Hp), f32).at[0, :H].set(b1)
    w2p = jnp.zeros((Hp, Hp), f32).at[:H, :H].set(w2)
    b2p = jnp.zeros((1, Hp), f32).at[0, :H].set(b2)
    w3p = jnp.zeros((Hp, Ap), f32).at[:H, :A].set(w3)
    b3p = jnp.zeros((1, Ap), f32).at[0, :A].set(b3)
    scale_p = jnp.zeros((1, Ap), f32).at[0, :A].set(
        jnp.broadcast_to(jnp.asarray(scale, f32), (A,)))
    bias_p = jnp.zeros((1, Ap), f32).at[0, :A].set(
        jnp.broadcast_to(jnp.asarray(bias, f32), (A,)))

    grid = (Mp // tm,)
    flops = 2 * Mp * (Kp * Hp + Hp * Hp + Hp * Ap)
    bytes_accessed = 4 * (Mp * Kp + Kp * Hp + Hp * Hp + Hp * Ap
                          + Mp * Ap + Hp + Hp + 3 * Ap)
    cost = pl.CostEstimate(flops=flops, transcendentals=Mp * Ap,
                           bytes_accessed=bytes_accessed)

    tile_map = lambda i: (i, 0)     # batch-tiled operands
    const_map = lambda i: (0, 0)    # weights/biases resident across the grid

    out = pl.pallas_call(
        _policy_kernel,
        out_shape=jax.ShapeDtypeStruct((Mp, Ap), f32),
        grid=grid,
        in_specs=[
            pl.BlockSpec((tm, Kp), tile_map),    # x
            pl.BlockSpec((Kp, Hp), const_map),   # W1
            pl.BlockSpec((1, Hp), const_map),    # b1
            pl.BlockSpec((Hp, Hp), const_map),   # W2
            pl.BlockSpec((1, Hp), const_map),    # b2
            pl.BlockSpec((Hp, Ap), const_map),   # W3
            pl.BlockSpec((1, Ap), const_map),    # b3
            pl.BlockSpec((1, Ap), const_map),    # action_scale
            pl.BlockSpec((1, Ap), const_map),    # action_bias
        ],
        out_specs=pl.BlockSpec((tm, Ap), tile_map),
        compiler_params=pltpu.CompilerParams(
            dimension_semantics=("parallel",)),
        cost_estimate=cost,
    )(xp, w1p, b1p, w2p, b2p, w3p, b3p, scale_p, bias_p)

    return out[:M, :A]


# ----------------------------------------------------------------------------
# Deterministic PyTorch-default-style init (uniform(+-1/sqrt(fan_in)))
# ----------------------------------------------------------------------------
def init_params(key, num_inputs, num_actions, hidden_dim):
    def linear_init(kw, kb, din, dout):
        bound = 1.0 / float(din) ** 0.5
        w = jax.random.uniform(kw, (din, dout), jnp.float32, -bound, bound)
        b = jax.random.uniform(kb, (dout,), jnp.float32, -bound, bound)
        return w, b

    k = jax.random.split(key, 6)
    return {
        "linear1": linear_init(k[0], k[1], num_inputs, hidden_dim),
        "linear2": linear_init(k[2], k[3], hidden_dim, hidden_dim),
        "mean": linear_init(k[4], k[5], hidden_dim, num_actions),
        # action_space is None in the module -> scale 1.0, bias 0.0
        "action_scale": 1.0,
        "action_bias": 0.0,
    }


if __name__ == "__main__":
    key = jax.random.PRNGKey(0)
    kp, kx = jax.random.split(key)

    batch, num_inputs, hidden_dim, num_actions = 2, 16, 32, 4

    params = init_params(kp, num_inputs, num_actions, hidden_dim)
    state = jax.random.normal(kx, (batch, num_inputs), jnp.float32)

    fwd = jax.jit(functools.partial(deterministic_policy_forward, params))
    mean = fwd(state)
    jax.block_until_ready(mean)

    # Pure-JAX reference of DeterministicPolicy.forward for a tolerance check.
    w1, b1 = params["linear1"]
    w2, b2 = params["linear2"]
    w3, b3 = params["mean"]
    h = jnp.maximum(state @ w1 + b1, 0.0)
    h = jnp.maximum(h @ w2 + b2, 0.0)
    ref = jnp.tanh(h @ w3 + b3) * params["action_scale"] + params["action_bias"]

    assert mean.shape == (batch, num_actions)
    assert bool(jnp.allclose(mean, ref, atol=1e-5, rtol=1e-5))
    print("KERNEL_OK")
</pallas_src>

<mosaic_0001>
module attributes {stable_mosaic.version = 11 : i64} {
  func.func @_policy_kernel(%arg0: i32, %arg1: memref<8x128xf32, #tpu.memory_space<vmem>>, %arg2: memref<128x128xf32, #tpu.memory_space<vmem>>, %arg3: memref<1x128xf32, #tpu.memory_space<vmem>>, %arg4: memref<128x128xf32, #tpu.memory_space<vmem>>, %arg5: memref<1x128xf32, #tpu.memory_space<vmem>>, %arg6: memref<128x128xf32, #tpu.memory_space<vmem>>, %arg7: memref<1x128xf32, #tpu.memory_space<vmem>>, %arg8: memref<1x128xf32, #tpu.memory_space<vmem>>, %arg9: memref<1x128xf32, #tpu.memory_space<vmem>>, %arg10: memref<8x128xf32, #tpu.memory_space<vmem>>) attributes {dimension_semantics = [#tpu.dimension_semantics<parallel>], iteration_bounds = array<i64: 1>, scalar_prefetch = 0 : i64, scratch_operands = 0 : i64, tpu.core_type = #tpu.core_type<tc>, window_params = [{transform_indices = @transform_0, window_bounds = array<i64: 8, 128>}, {pipeline_mode = #tpu.pipeline_mode<synchronous>, transform_indices = @transform_1, window_bounds = array<i64: 128, 128>}, {pipeline_mode = #tpu.pipeline_mode<synchronous>, transform_indices = @transform_2, window_bounds = array<i64: 1, 128>}, {pipeline_mode = #tpu.pipeline_mode<synchronous>, transform_indices = @transform_3, window_bounds = array<i64: 128, 128>}, {pipeline_mode = #tpu.pipeline_mode<synchronous>, transform_indices = @transform_4, window_bounds = array<i64: 1, 128>}, {pipeline_mode = #tpu.pipeline_mode<synchronous>, transform_indices = @transform_5, window_bounds = array<i64: 128, 128>}, {pipeline_mode = #tpu.pipeline_mode<synchronous>, transform_indices = @transform_6, window_bounds = array<i64: 1, 128>}, {pipeline_mode = #tpu.pipeline_mode<synchronous>, transform_indices = @transform_7, window_bounds = array<i64: 1, 128>}, {pipeline_mode = #tpu.pipeline_mode<synchronous>, transform_indices = @transform_8, window_bounds = array<i64: 1, 128>}, {transform_indices = @transform_9, window_bounds = array<i64: 8, 128>}]} {
    %c0 = arith.constant 0 : index
    %c0_0 = arith.constant 0 : index
    %0 = vector.load %arg1[%c0, %c0_0] : memref<8x128xf32, #tpu.memory_space<vmem>>, vector<8x128xf32>
    %c0_1 = arith.constant 0 : index
    %c0_2 = arith.constant 0 : index
    %1 = vector.load %arg2[%c0_1, %c0_2] : memref<128x128xf32, #tpu.memory_space<vmem>>, vector<128x128xf32>
    %cst = arith.constant dense<0.000000e+00> : vector<8x128xf32>
    %2 = tpu.matmul %0, %1, %cst {dimension_numbers = #tpu.dot_dimension_numbers<[1], [0], [0], [1], [0, 0, 1, 1], [], []>} : vector<8x128xf32>, vector<128x128xf32>, vector<8x128xf32> -> vector<8x128xf32>
    %c0_3 = arith.constant 0 : index
    %c0_4 = arith.constant 0 : index
    %3 = vector.load %arg3[%c0_3, %c0_4] : memref<1x128xf32, #tpu.memory_space<vmem>>, vector<1x128xf32>
    %4 = vector.broadcast %3 : vector<1x128xf32> to vector<8x128xf32>
    %5 = arith.addf %2, %4 : vector<8x128xf32>
    %cst_5 = arith.constant 0.000000e+00 : f32
    %6 = vector.broadcast %cst_5 : f32 to vector<8x128xf32>
    %7 = arith.maximumf %5, %6 : vector<8x128xf32>
    %c0_6 = arith.constant 0 : index
    %c0_7 = arith.constant 0 : index
    %8 = vector.load %arg4[%c0_6, %c0_7] : memref<128x128xf32, #tpu.memory_space<vmem>>, vector<128x128xf32>
    %cst_8 = arith.constant dense<0.000000e+00> : vector<8x128xf32>
    %9 = tpu.matmul %7, %8, %cst_8 {dimension_numbers = #tpu.dot_dimension_numbers<[1], [0], [0], [1], [0, 0, 1, 1], [], []>} : vector<8x128xf32>, vector<128x128xf32>, vector<8x128xf32> -> vector<8x128xf32>
    %c0_9 = arith.constant 0 : index
    %c0_10 = arith.constant 0 : index
    %10 = vector.load %arg5[%c0_9, %c0_10] : memref<1x128xf32, #tpu.memory_space<vmem>>, vector<1x128xf32>
    %11 = vector.broadcast %10 : vector<1x128xf32> to vector<8x128xf32>
    %12 = arith.addf %9, %11 : vector<8x128xf32>
    %cst_11 = arith.constant 0.000000e+00 : f32
    %13 = vector.broadcast %cst_11 : f32 to vector<8x128xf32>
    %14 = arith.maximumf %12, %13 : vector<8x128xf32>
    %c0_12 = arith.constant 0 : index
    %c0_13 = arith.constant 0 : index
    %15 = vector.load %arg6[%c0_12, %c0_13] : memref<128x128xf32, #tpu.memory_space<vmem>>, vector<128x128xf32>
    %cst_14 = arith.constant dense<0.000000e+00> : vector<8x128xf32>
    %16 = tpu.matmul %14, %15, %cst_14 {dimension_numbers = #tpu.dot_dimension_numbers<[1], [0], [0], [1], [0, 0, 1, 1], [], []>} : vector<8x128xf32>, vector<128x128xf32>, vector<8x128xf32> -> vector<8x128xf32>
    %c0_15 = arith.constant 0 : index
    %c0_16 = arith.constant 0 : index
    %17 = vector.load %arg7[%c0_15, %c0_16] : memref<1x128xf32, #tpu.memory_space<vmem>>, vector<1x128xf32>
    %18 = vector.broadcast %17 : vector<1x128xf32> to vector<8x128xf32>
    %19 = arith.addf %16, %18 : vector<8x128xf32>
    %20 = math.tanh %19 : vector<8x128xf32>
    %c0_17 = arith.constant 0 : index
    %c0_18 = arith.constant 0 : index
    %21 = vector.load %arg8[%c0_17, %c0_18] : memref<1x128xf32, #tpu.memory_space<vmem>>, vector<1x128xf32>
    %22 = vector.broadcast %21 : vector<1x128xf32> to vector<8x128xf32>
    %23 = arith.mulf %20, %22 : vector<8x128xf32>
    %c0_19 = arith.constant 0 : index
    %c0_20 = arith.constant 0 : index
    %24 = vector.load %arg9[%c0_19, %c0_20] : memref<1x128xf32, #tpu.memory_space<vmem>>, vector<1x128xf32>
    %25 = vector.broadcast %24 : vector<1x128xf32> to vector<8x128xf32>
    %26 = arith.addf %23, %25 : vector<8x128xf32>
    %c0_21 = arith.constant 0 : index
    %c0_22 = arith.constant 0 : index
    %27 = vector.load %arg10[%c0_21, %c0_22] : memref<8x128xf32, #tpu.memory_space<vmem>>, vector<8x128xf32>
    tpu.vector_store %arg10[%c0_21, %c0_22], %26 {strides = array<i32>} : memref<8x128xf32, #tpu.memory_space<vmem>>, vector<8x128xf32>,
    return
  }
  func.func @transform_0(%arg0: i32) -> (i32, i32) {
    %c0_i32 = arith.constant 0 : i32
    %c0_i32_0 = arith.constant 0 : i32
    return %arg0, %c0_i32 : i32, i32
  }
  func.func @transform_1(%arg0: i32) -> (i32, i32) {
    %c0_i32 = arith.constant 0 : i32
    %c0_i32_0 = arith.constant 0 : i32
    %c0_i32_1 = arith.constant 0 : i32
    return %c0_i32, %c0_i32_0 : i32, i32
  }
  func.func @transform_2(%arg0: i32) -> (i32, i32) {
    %c0_i32 = arith.constant 0 : i32
    %c0_i32_0 = arith.constant 0 : i32
    %c0_i32_1 = arith.constant 0 : i32
    return %c0_i32, %c0_i32_0 : i32, i32
  }
  func.func @transform_3(%arg0: i32) -> (i32, i32) {
    %c0_i32 = arith.constant 0 : i32
    %c0_i32_0 = arith.constant 0 : i32
    %c0_i32_1 = arith.constant 0 : i32
    return %c0_i32, %c0_i32_0 : i32, i32
  }
  func.func @transform_4(%arg0: i32) -> (i32, i32) {
    %c0_i32 = arith.constant 0 : i32
    %c0_i32_0 = arith.constant 0 : i32
    %c0_i32_1 = arith.constant 0 : i32
    return %c0_i32, %c0_i32_0 : i32, i32
  }
  func.func @transform_5(%arg0: i32) -> (i32, i32) {
    %c0_i32 = arith.constant 0 : i32
    %c0_i32_0 = arith.constant 0 : i32
    %c0_i32_1 = arith.constant 0 : i32
    return %c0_i32, %c0_i32_0 : i32, i32
  }
  func.func @transform_6(%arg0: i32) -> (i32, i32) {
    %c0_i32 = arith.constant 0 : i32
    %c0_i32_0 = arith.constant 0 : i32
    %c0_i32_1 = arith.constant 0 : i32
    return %c0_i32, %c0_i32_0 : i32, i32
  }
  func.func @transform_7(%arg0: i32) -> (i32, i32) {
    %c0_i32 = arith.constant 0 : i32
    %c0_i32_0 = arith.constant 0 : i32
    %c0_i32_1 = arith.constant 0 : i32
    return %c0_i32, %c0_i32_0 : i32, i32
  }
  func.func @transform_8(%arg0: i32) -> (i32, i32) {
    %c0_i32 = arith.constant 0 : i32
    %c0_i32_0 = arith.constant 0 : i32
    %c0_i32_1 = arith.constant 0 : i32
    return %c0_i32, %c0_i32_0 : i32, i32
  }
  func.func @transform_9(%arg0: i32) -> (i32, i32) {
    %c0_i32 = arith.constant 0 : i32
    %c0_i32_0 = arith.constant 0 : i32
    return %arg0, %c0_i32 : i32, i32
  }
}

</mosaic_0001>

<bundles_post_ra>
// kernel: deterministic_policy_forward.1
= control target key start
LH: loop header
LB: loop body
LE: loop exit
PB: predicated region body
PF: predicated region fallthrough
CT: control target
= control target key end

     0   :  { %14 = vsyncpa [#allocation3], 0  ;;  %s853_s0 = inlined_call_operand.vmem [shape: f32[8,128], index: 0, kind: input, shape index: {}]   ;;  %s854_s1 = inlined_call_operand.hbm [shape: f32[128,128], index: 1, kind: input, shape index: {}]   ;;  %s855_s2 = inlined_call_operand.vmem [shape: f32[1,128], index: 2, kind: input, shape index: {}]   ;;  %s856_s3 = inlined_call_operand.hbm [shape: f32[128,128], index: 3, kind: input, shape index: {}]   ;;  %s857_s4 = inlined_call_operand.vmem [shape: f32[1,128], index: 4, kind: input, shape index: {}]   ;;  %s858_s5 = inlined_call_operand.hbm [shape: f32[128,128], index: 5, kind: input, shape index: {}]   ;;  %s859_s6 = inlined_call_operand.vmem [shape: f32[1,128], index: 6, kind: input, shape index: {}]   ;;  %s860_s7 = inlined_call_operand.vmem [shape: f32[1,128], index: 7, kind: input, shape index: {}]   ;;  %s861_s8 = inlined_call_operand.vmem [shape: f32[1,128], index: 8, kind: input, shape index: {}]   ;;  %s862_s9 = inlined_call_operand.vmem [shape: f32[8,128], index: 9, kind: output, shape index: {}]  }
   0x1   :  { %15 = vsyncpa [#allocation5], 0  ;;  %s692_s30 = smov [#allocation4]   ;;  %s693_s11 = smov [#allocation2]  }
   0x2   :  { %s37_s10 = sshll.u32 %s692_s30, 4  ;;  %s23_s12 = sshll.u32 %s693_s11, 4  ;;  %s38_s10 = int_to_ptr.vmem [resolvable:$true] %s37_s10  ;;  %s750_s12 = int_to_ptr.vmem [resolvable:$true] %s23_s12 }
   0x3   :  { %s622_s15 = scalar_lea.hbm %s856_s3, 2048 }
   0x4   :  { %p623_p0 = scmp.ne.s32.totalorder %s856_s3, %s622_s15  ;;  %p626_p1 = scmp.lt.u32.totalorder %s622_s15, %s856_s3 }
   0x6   :  { %p628_p2 = pnand %p626_p1, %p623_p0 }
   0x8   :  { %631 = shalt.err (!%p628_p2)
}
   0x9   :  { %s632_s20 = scalar_lea.vmem %s38_s10, 2048  ;;  %p637_p4 = scmp.lt.s32.totalorder %s38_s10, %s38_s10 }
   0xa   :  { %p633_p3 = scmp.ne.s32.totalorder %s38_s10, %s632_s20  ;;  %p638_p5 = scmp.lt.s32.totalorder %s632_s20, %s632_s20 }
   0xc   :  { %p639_p6 = por %p638_p5, %p637_p4 }
   0xe   :  { %p640_p7 = pnand %p639_p6, %p633_p3 }
  0x10   :  { %643 = shalt.err (!%p640_p7)
}
  0x11   :  { %s694_s21 = smov 128   ;;  %s695_s22 = smov 8  }
  0x12   :  { %43 = dma.hbm_to_vmem [thread:$0]  %s856_s3, 2048, %s38_s10, [#allocation5], %s694_s21, %s694_s21, %s695_s22  }
  0x13   :  { %s644_s27 = scalar_lea.hbm %s854_s1, 2048 }
  0x14   :  { %p645_p8 = scmp.ne.s32.totalorder %s854_s1, %s644_s27  ;;  %p648_p9 = scmp.lt.u32.totalorder %s644_s27, %s854_s1 }
  0x16   :  { %p650_p10 = pnand %p648_p9, %p645_p8 }
  0x18   :  { %653 = shalt.err (!%p650_p10)
}
  0x19   :  { %s654_s13 = scalar_lea.vmem %s750_s12, 2048  ;;  %p659_p12 = scmp.lt.s32.totalorder %s750_s12, %s750_s12 }
  0x1a   :  { %p655_p11 = scmp.ne.s32.totalorder %s750_s12, %s654_s13  ;;  %p660_p13 = scmp.lt.s32.totalorder %s654_s13, %s654_s13 }
  0x1c   :  { %p661_p0 = por %p660_p13, %p659_p12 }
  0x1e   :  { %p662_p1 = pnand %p661_p0, %p655_p11 }
  0x20   :  { %665 = shalt.err (!%p662_p1)
}
  0x21   :  { %29 = dma.hbm_to_vmem [thread:$0]  %s854_s1, 2048, %s750_s12, [#allocation3], %s694_s21, %s694_s21, %s695_s22  }
  0x22   :  { %s696_s14 = smov [#allocation6]   ;;  %s666_s18 = scalar_lea.hbm %s858_s5, 2048 }
  0x23   :  { %s51_s15 = sshll.u32 %s696_s14, 4  ;;  %p667_p2 = scmp.ne.s32.totalorder %s858_s5, %s666_s18  ;;  %s52_s15 = int_to_ptr.vmem [resolvable:$true] %s51_s15 }
  0x24   :  { %p670_p3 = scmp.lt.u32.totalorder %s666_s18, %s858_s5 }
  0x26   :  { %p672_p4 = pnand %p670_p3, %p667_p2 }
  0x28   :  { %675 = shalt.err (!%p672_p4)
}
  0x29   :  { %s676_s25 = scalar_lea.vmem %s52_s15, 2048  ;;  %p681_p6 = scmp.lt.s32.totalorder %s52_s15, %s52_s15 }
  0x2a   :  { %p677_p5 = scmp.ne.s32.totalorder %s52_s15, %s676_s25  ;;  %p682_p7 = scmp.lt.s32.totalorder %s676_s25, %s676_s25 }
  0x2c   :  { %p683_p8 = por %p682_p7, %p681_p6 }
  0x2e   :  { %p684_p9 = pnand %p683_p8, %p677_p5 }
  0x30   :  { %687 = shalt.err (!%p684_p9)
}
  0x31   :  { %57 = dma.hbm_to_vmem [thread:$0]  %s858_s5, 2048, %s52_s15, [#allocation5], %s694_s21, %s694_s21, %s695_s22  }
  0x32   :  { %688 = dma.done.wait [#allocation3], 2048  }
  0x33   :  { %689 = vsyncadd [#allocation3], 4294965248 }
  0x34   :  { %690 = dma.done.wait [#allocation5], 4096  }
  0x35   :  { %691 = vsyncadd [#allocation5], 4294963200  ;;  %v697_v0 = vmov 0.0|0.0   ;;  %vm698_vm0 = vmmov 0   ;;  %v699_v1 = vmov 0.0   ;;  %v74_v2 = vld [vmem:[#allocation2] sm:$0xff] }
  0x36   :  { %540 = vmatprep.subr.bf16.mxu0 %v697_v0  ;;  %467 = vmatprep.mubr.msk.f32.mxu0 %vm698_vm0, %v699_v1  ;;  %v75_v3 = vld [vmem:[#allocation2 + $0x8] sm:$0xff]  ;;  %v76_v4 = vld [vmem:[#allocation2 + $0x10] sm:$0xff]  ;;  %v77_v6 = vld [vmem:[#allocation2 + $0x18] sm:$0xff] }
  0x37   :  { %564 = vmatprep.subr.bf16.mxu1 %v697_v0  ;;  %502 = vmatprep.mubr.msk.f32.mxu1 %vm698_vm0, %v699_v1  ;;  %v541_v5 = vpack.c.bf16 %v75_v3, %v74_v2  ;;  %v544_v7 = vpack.c.bf16 %v77_v6, %v76_v4  ;;  %v78_v8 = vld [vmem:[#allocation2 + $0x20] sm:$0xff]  ;;  %v79_v9 = vld [vmem:[#allocation2 + $0x28] sm:$0xff]  ;;  %v170_v12 = vld [vmem:[#allocation4 + $0x10] sm:$0xff] }
  0x38   :  { %v168_v10 = vld [vmem:[#allocation4] sm:$0xff]  ;;  %v169_v11 = vld [vmem:[#allocation4 + $0x8] sm:$0xff]  ;;  %v171_v13 = vld [vmem:[#allocation4 + $0x18] sm:$0xff]  ;;  %v547_v14 = vpack.c.bf16 %v79_v9, %v78_v8 }
  0x39   :  { %542 = vmatpush3.bf16.msra.mxu0 %v541_v5  ;;  %v565_v15 = vpack.c.bf16 %v169_v11, %v168_v10  ;;  %v80_v16 = vld [vmem:[#allocation2 + $0x30] sm:$0xff]  ;;  %v81_v17 = vld [vmem:[#allocation2 + $0x38] sm:$0xff]  ;;  %v568_v18 = vpack.c.bf16 %v171_v13, %v170_v12  ;;  %v172_v19 = vld [vmem:[#allocation4 + $0x20] sm:$0xff] }
  0x3a   :  { %543 = vmatprep.subr.bf16.mxu0 %v697_v0  ;;  %v173_v20 = vld [vmem:[#allocation4 + $0x28] sm:$0xff]  ;;  %v550_v21 = vpack.c.bf16 %v81_v17, %v80_v16  ;;  %v82_v22 = vld [vmem:[#allocation2 + $0x40] sm:$0xff]  ;;  %v174_v25 = vld [vmem:[#allocation4 + $0x30] sm:$0xff] }
  0x3b   :  { %566 = vmatpush3.bf16.msra.mxu1 %v565_v15  ;;  %v83_v23 = vld [vmem:[#allocation2 + $0x48] sm:$0xff]  ;;  %v571_v24 = vpack.c.bf16 %v173_v20, %v172_v19  ;;  %v175_v26 = vld [vmem:[#allocation4 + $0x38] sm:$0xff]  ;;  %v84_v28 = vld [vmem:[#allocation2 + $0x50] sm:$0xff] }
  0x3c   :  { %567 = vmatprep.subr.bf16.mxu1 %v697_v0  ;;  %v553_v27 = vpack.c.bf16 %v83_v23, %v82_v22  ;;  %v85_v29 = vld [vmem:[#allocation2 + $0x58] sm:$0xff]  ;;  %v574_v30 = vpack.c.bf16 %v175_v26, %v174_v25  ;;  %v176_v31 = vld [vmem:[#allocation4 + $0x40] sm:$0xff]  ;;  %v177_v32 = vld [vmem:[#allocation4 + $0x48] sm:$0xff] }
  0x3d   :  { %545 = vmatpush3.bf16.msra.mxu0 %v544_v7  ;;  %v556_v33 = vpack.c.bf16 %v85_v29, %v84_v28  ;;  %v86_v34 = vld [vmem:[#allocation2 + $0x60] sm:$0xff]  ;;  %v87_v35 = vld [vmem:[#allocation2 + $0x68] sm:$0xff]  ;;  %v577_v36 = vpack.c.bf16 %v177_v32, %v176_v31  ;;  %v178_v37 = vld [vmem:[#allocation4 + $0x50] sm:$0xff] }
  0x3e   :  { %546 = vmatprep.subr.bf16.mxu0 %v697_v0  ;;  %v179_v38 = vld [vmem:[#allocation4 + $0x58] sm:$0xff]  ;;  %v559_v39 = vpack.c.bf16 %v87_v35, %v86_v34  ;;  %v88_v40 = vld [vmem:[#allocation2 + $0x70] sm:$0xff]  ;;  %v180_v43 = vld [vmem:[#allocation4 + $0x60] sm:$0xff] }
  0x3f   :  { %569 = vmatpush3.bf16.msra.mxu1 %v568_v18  ;;  %v89_v41 = vld [vmem:[#allocation2 + $0x78] sm:$0xff]  ;;  %v580_v42 = vpack.c.bf16 %v179_v38, %v178_v37  ;;  %v181_v44 = vld [vmem:[#allocation4 + $0x68] sm:$0xff]  ;;  %v73_v47 = vld [vmem:[%s853_s0] sm:$0xff] }
  0x40   :  { %570 = vmatprep.subr.bf16.mxu1 %v697_v0  ;;  %v562_v45 = vpack.c.bf16 %v89_v41, %v88_v40  ;;  %v583_v46 = vpack.c.bf16 %v181_v44, %v180_v43  ;;  %v182_v48 = vld [vmem:[#allocation4 + $0x70] sm:$0xff]  ;;  %v183_v49 = vld [vmem:[#allocation4 + $0x78] sm:$0xff]  ;;  %v262_v51 = vld [vmem:[#allocation6] sm:$0xff] }
  0x41   :  { %548 = vmatpush3.bf16.msra.mxu0 %v547_v14  ;;  %v586_v50 = vpack.c.bf16 %v183_v49, %v182_v48  ;;  %v263_v52 = vld [vmem:[#allocation6 + $0x8] sm:$0xff]  ;;  %v264_v53 = vld [vmem:[#allocation6 + $0x10] sm:$0xff]  ;;  %v265_v55 = vld [vmem:[#allocation6 + $0x18] sm:$0xff] }
  0x42   :  { %549 = vmatprep.subr.bf16.mxu0 %v697_v0  ;;  %v589_v54 = vpack.c.bf16 %v263_v52, %v262_v51  ;;  %v592_v56 = vpack.c.bf16 %v265_v55, %v264_v53  ;;  %v266_v57 = vld [vmem:[#allocation6 + $0x20] sm:$0xff]  ;;  %v267_v58 = vld [vmem:[#allocation6 + $0x28] sm:$0xff]  ;;  %v268_v60 = vld [vmem:[#allocation6 + $0x30] sm:$0xff] }
  0x43   :  { %572 = vmatpush3.bf16.msra.mxu1 %v571_v24  ;;  %v595_v59 = vpack.c.bf16 %v267_v58, %v266_v57  ;;  %v269_v61 = vld [vmem:[#allocation6 + $0x38] sm:$0xff]  ;;  %v270_v63 = vld [vmem:[#allocation6 + $0x40] sm:$0xff]  ;;  %v272_v3 = vld [vmem:[#allocation6 + $0x50] sm:$0xff] }
  0x44   :  { %573 = vmatprep.subr.bf16.mxu1 %v697_v0  ;;  %v598_v62 = vpack.c.bf16 %v269_v61, %v268_v60  ;;  %v273_v4 = vld [vmem:[#allocation6 + $0x58] sm:$0xff]  ;;  %v274_v6 = vld [vmem:[#allocation6 + $0x60] sm:$0xff]  ;;  %v275_v7 = vld [vmem:[#allocation6 + $0x68] sm:$0xff] }
  0x45   :  { %551 = vmatpush3.bf16.msra.mxu0 %v550_v21  ;;  %v604_v5 = vpack.c.bf16 %v273_v4, %v272_v3  ;;  %v607_v8 = vpack.c.bf16 %v275_v7, %v274_v6  ;;  %v379_v9 = vld [vmem:[%s855_s2] ss:$0 sm:$0xff]  ;;  %v276_v14 = vld [vmem:[#allocation6 + $0x70] sm:$0xff]  ;;  %v277_v15 = vld [vmem:[#allocation6 + $0x78] sm:$0xff] }
  0x46   :  { %552 = vmatprep.subr.bf16.mxu0 %v697_v0  ;;  %v610_v16 = vpack.c.bf16 %v277_v15, %v276_v14  ;;  %v380_v17 = vld [vmem:[%s857_s4] ss:$0 sm:$0xff] }
  0x47   :  { %575 = vmatpush3.bf16.msra.mxu1 %v574_v30  ;;  %v381_v21 = vld [vmem:[%s859_s6] ss:$0 sm:$0xff] }
  0x48   :  { %576 = vmatprep.subr.bf16.mxu1 %v697_v0  ;;  %v382_v25 = vld [vmem:[%s860_s7] ss:$0 sm:$0xff] }
  0x49   :  { %554 = vmatpush3.bf16.msra.mxu0 %v553_v27  ;;  %v383_v27 = vld [vmem:[%s861_s8] ss:$0 sm:$0xff] }
  0x4a   :  { %555 = vmatprep.subr.bf16.mxu0 %v697_v0 }
  0x4b   :  { %578 = vmatpush3.bf16.msra.mxu1 %v577_v36 }
  0x4c   :  { %579 = vmatprep.subr.bf16.mxu1 %v697_v0 }
  0x4d   :  { %557 = vmatpush3.bf16.msra.mxu0 %v556_v33 }
  0x4e   :  { %558 = vmatprep.subr.bf16.mxu0 %v697_v0 }
  0x4f   :  { %581 = vmatpush3.bf16.msra.mxu1 %v580_v42 }
  0x50   :  { %582 = vmatprep.subr.bf16.mxu1 %v697_v0 }
  0x51   :  { %560 = vmatpush3.bf16.msra.mxu0 %v559_v39 }
  0x52   :  { %561 = vmatprep.subr.bf16.mxu0 %v697_v0 }
  0x53   :  { %584 = vmatpush3.bf16.msra.mxu1 %v583_v46 }
  0x54   :  { %585 = vmatprep.subr.bf16.mxu1 %v697_v0 }
  0x55   :  { %563 = vmatpush3.bf16.msra.mxu0 %v562_v45 }
  0x56   :  { %588 = vmatprep.subr.bf16.mxu0 %v697_v0 }
  0x57   :  { %587 = vmatpush3.bf16.msra.mxu1 %v586_v50 }
  0x58   :  { %468 = vmatmul.mubr.f32.vlgmr.msra.gmra.mrb[0].mxu0 %v73_v47 }
  0x59   :  { %537 = vmatprep.mubr.msk.f32.mxu0 %vm698_vm0, %v699_v1  ;;  %590 = vmatpush3.bf16.msra.mxu0 %v589_v54  ;;  %v271_v1 = vld [vmem:[#allocation6 + $0x48] sm:$0xff] }
  0x5a   :  { %591 = vmatprep.subr.bf16.mxu0 %v697_v0  ;;  %v601_v2 = vpack.c.bf16 %v271_v1, %v270_v63 }
  0x5d   :  { %593 = vmatpush3.bf16.msra.mxu0 %v592_v56 }
  0x5e   :  { %594 = vmatprep.subr.bf16.mxu0 %v697_v0 }
  0x61   :  { %596 = vmatpush3.bf16.msra.mxu0 %v595_v59 }
  0x62   :  { %597 = vmatprep.subr.bf16.mxu0 %v697_v0 }
  0x65   :  { %599 = vmatpush3.bf16.msra.mxu0 %v598_v62 }
  0x66   :  { %600 = vmatprep.subr.bf16.mxu0 %v697_v0 }
  0x69   :  { %602 = vmatpush3.bf16.msra.mxu0 %v601_v2 }
  0x6a   :  { %603 = vmatprep.subr.bf16.mxu0 %v697_v0 }
  0x6d   :  { %605 = vmatpush3.bf16.msra.mxu0 %v604_v5 }
  0x6e   :  { %606 = vmatprep.subr.bf16.mxu0 %v697_v0 }
  0x71   :  { %608 = vmatpush3.bf16.msra.mxu0 %v607_v8 }
  0x72   :  { %609 = vmatprep.subr.bf16.mxu0 %v697_v0 }
  0x75   :  { %611 = vmatpush3.bf16.msra.mxu0 %v610_v16 }
 0x12b   :  { %v163_v10 = vpop.f32.mrb[0].mxu0 }
 0x12c   :  { %v164_v11 = vadd.f32 %v379_v9, %v163_v10  ;;  %v469_v12 = vpop.f32.mrb[1].mxu0 }
 0x12e   :  { %v167_v13 = vmax.f32 %v164_v11, 0.0 }
 0x130   :  { %503 = vmatmul.mubr.f32.vlgmr.msra.gmra.mrb[0].mxu1 %v167_v13 }
 0x203   :  { %v257_v18 = vpop.f32.mrb[0].mxu1 }
 0x204   :  { %v258_v19 = vadd.f32 %v380_v17, %v257_v18  ;;  %v504_v0 = vpop.f32.mrb[1].mxu1 }
 0x206   :  { %v261_v20 = vmax.f32 %v258_v19, 0.0 }
 0x208   :  { %538 = vmatmul.mubr.f32.vlgmr.msra.gmra.mrb[2].mxu0 %v261_v20 }
 0x2db   :  { %v351_v22 = vpop.f32.mrb[2].mxu0 }
 0x2dc   :  { %v352_v23 = vadd.f32 %v381_v21, %v351_v22  ;;  %v539_v24 = vpop.f32.mrb[3].mxu0 }
 0x2de   :  { %620 = vtanh.f32 %v352_v23 }
 0x2e8   :  { %v621_v26 = vpop.eup %620 }
 0x2e9   :  { %v363_v28 = vmul.f32 %v621_v26, %v382_v25 }
 0x2eb   :  { %v371_v29 = vadd.f32 %v383_v27, %v363_v28 }
 0x2ed   :  { %372 = vst [vmem:[%s862_s9] sm:$0xff] %v371_v29 }
 0x2ee   :  { %377 = vsyncpa [#allocation3], 1 }
 0x2ef   :  { %378 = vsyncpa [#allocation5], 1 }

</bundles_post_ra>
